<compile_context>
chip_gen: v5e
topology: v5e:2x2
jax: 0.10.0
libtpu: 0.0.40
codegen_flags: <defaults>
</compile_context>

<pallas_src>
import functools
import math

import jax
import jax.numpy as jnp
from jax.experimental import pallas as pl
from jax.experimental.pallas import tpu as pltpu


# ----------------------------------------------------------------------------
# Parameter / buffer setup (mirrors PositionalEncoding.__init__)
# ----------------------------------------------------------------------------
def make_positional_encoding_table(d_model, max_len=5000, dtype=jnp.float32):
    """Sin/cos table, shape (max_len, d_model) == torch buffer pe[:, 0, :]."""
    position = jnp.arange(0, max_len, dtype=jnp.float32)[:, None]            # (L, 1)
    div_term = jnp.exp(
        jnp.arange(0, d_model, 2, dtype=jnp.float32) * -(math.log(10000.0) / d_model)
    )                                                                         # (D/2,)
    ang = position * div_term                                                 # (L, D/2)
    # interleave -> even lanes sin, odd lanes cos (matches pe[:,0,0::2]/[1::2])
    pe = jnp.stack([jnp.sin(ang), jnp.cos(ang)], axis=-1).reshape(max_len, d_model)
    return pe.astype(dtype)


# ----------------------------------------------------------------------------
# Kernels
# ----------------------------------------------------------------------------
def _pe_add_kernel(x_ref, pe_ref, o_ref):
    # (tS, B, D) + (tS, 1, D): sublane broadcast over batch, all in VMEM.
    pe = pe_ref[...].astype(jnp.float32)[:, None, :]
    y = x_ref[...].astype(jnp.float32) + pe
    o_ref[...] = y.astype(o_ref.dtype)


def _pe_add_dropout_kernel(x_ref, pe_ref, bits_ref, o_ref, *, threshold, inv_keep):
    pe = pe_ref[...].astype(jnp.float32)[:, None, :]
    y = x_ref[...].astype(jnp.float32) + pe
    # Inverted dropout via integer-threshold compare (no int->float convert,
    # no float uniform): bits are 23 uniform non-negative bits per element.
    keep = bits_ref[...] >= jnp.int32(threshold)          # P(keep) = 1 - p
    y = jnp.where(keep, y * jnp.float32(inv_keep), jnp.float32(0.0))
    o_ref[...] = y.astype(o_ref.dtype)


# ----------------------------------------------------------------------------
# Wrapper
# ----------------------------------------------------------------------------
def _pick_tile_s(S, B, D, itemsize, max_len, target_bytes=2 * 1024 * 1024):
    """Pick a seq-tile: ~2 MiB per x block (x + bits + out, double-buffered,
    stays well under v7x's 32 MiB scoped VMEM), multiple of 8 so the 2-D pe
    block satisfies the sublane tiling rule."""
    row_bytes = max(1, B * D * itemsize)
    t = target_bytes // row_bytes
    t = int(max(8, min(t, S, max_len)))
    return max(8, (t // 8) * 8)


def positional_encoding_forward(x, pe, *, dropout=0.1, training=True, rng_key=None):
    """x: (seq_len, batch, d_model); pe: (max_len, d_model) table."""
    S, B, D = x.shape
    max_len = pe.shape[0]
    assert S <= max_len, "sequence longer than positional table"

    tS = _pick_tile_s(S, B, D, jnp.dtype(x.dtype).itemsize, max_len)
    grid = (pl.cdiv(S, tS),)

    x_spec = pl.BlockSpec((tS, B, D), lambda i: (i, 0, 0))
    # pe[:S] is folded into the index_map over the FULL table: only rows < S
    # are ever DMA'd, no separate XLA slice/copy outside the kernel.
    pe_spec = pl.BlockSpec((tS, D), lambda i: (i, 0))
    out_spec = pl.BlockSpec((tS, B, D), lambda i: (i, 0, 0))

    compiler_params = pltpu.CompilerParams(dimension_semantics=("parallel",))

    p = float(dropout)
    if training and p > 0.0:
        if rng_key is None:
            rng_key = jax.random.PRNGKey(0)
        # 23 uniform bits per element, streamed through the same tiling as x.
        # (XLA fuses bits-gen + mask + cast; distribution matches torch
        # dropout, exact mask differs from torch's RNG stream.)
        raw = jax.random.bits(rng_key, (S, B, D), dtype=jnp.uint32)
        bits = (raw & jnp.uint32(0x7FFFFF)).astype(jnp.int32)
        threshold = int(round(p * float(1 << 23)))        # drop iff bits < thr
        kernel = functools.partial(
            _pe_add_dropout_kernel, threshold=threshold, inv_keep=1.0 / (1.0 - p)
        )
        return pl.pallas_call(
            kernel,
            out_shape=jax.ShapeDtypeStruct((S, B, D), x.dtype),
            grid=grid,
            in_specs=[x_spec, pe_spec, pl.BlockSpec((tS, B, D), lambda i: (i, 0, 0))],
            out_specs=out_spec,
            compiler_params=compiler_params,
        )(x, pe, bits)

    # Eval (or p == 0): dropout is the identity.
    return pl.pallas_call(
        _pe_add_kernel,
        out_shape=jax.ShapeDtypeStruct((S, B, D), x.dtype),
        grid=grid,
        in_specs=[x_spec, pe_spec],
        out_specs=out_spec,
        compiler_params=compiler_params,
    )(x, pe)


# ----------------------------------------------------------------------------
# Demo / self-check
# ----------------------------------------------------------------------------
if __name__ == "__main__":
    d_model = 32
    seq_len = 8
    batch = 2
    max_len = 64
    p = 0.1

    key = jax.random.PRNGKey(0)
    kx, kdrop = jax.random.split(key)
    x = jax.random.normal(kx, (seq_len, batch, d_model), dtype=jnp.float32)
    pe = make_positional_encoding_table(d_model, max_len=max_len)

    # Train mode (dropout active).
    y_train = positional_encoding_forward(x, pe, dropout=p, training=True, rng_key=kdrop)
    jax.block_until_ready(y_train)
    assert y_train.shape == x.shape and y_train.dtype == x.dtype

    # Eval mode (dropout is identity) -- must match the pure-JAX reference.
    y_eval = positional_encoding_forward(x, pe, dropout=p, training=False)
    jax.block_until_ready(y_eval)
    ref = x + pe[:seq_len][:, None, :]
    assert jnp.allclose(y_eval, ref, atol=1e-6, rtol=1e-6)

    # Train-mode sanity: every element is either dropped (0) or scaled by 1/(1-p).
    scaled = ref / (1.0 - p)
    ok = jnp.isclose(y_train, 0.0, atol=1e-6) | jnp.isclose(
        y_train, scaled, atol=1e-5, rtol=1e-5
    )
    assert bool(jnp.all(ok))

    print("KERNEL_OK")
</pallas_src>

<mosaic_0001>
module attributes {stable_mosaic.version = 11 : i64} {
  func.func @_pe_add_dropout_kernel(%arg0: i32, %arg1: memref<8x2x32xf32, #tpu.memory_space<vmem>>, %arg2: memref<8x32xf32, #tpu.memory_space<vmem>>, %arg3: memref<8x2x32xi32, #tpu.memory_space<vmem>>, %arg4: memref<8x2x32xf32, #tpu.memory_space<vmem>>) attributes {dimension_semantics = [#tpu.dimension_semantics<parallel>], iteration_bounds = array<i64: 1>, scalar_prefetch = 0 : i64, scratch_operands = 0 : i64, tpu.core_type = #tpu.core_type<tc>, window_params = [{transform_indices = @transform_0, window_bounds = array<i64: 8, 2, 32>}, {transform_indices = @transform_1, window_bounds = array<i64: 8, 32>}, {transform_indices = @transform_2, window_bounds = array<i64: 8, 2, 32>}, {transform_indices = @transform_3, window_bounds = array<i64: 8, 2, 32>}]} {
    %c0 = arith.constant 0 : index
    %c0_0 = arith.constant 0 : index
    %0 = vector.load %arg2[%c0, %c0_0] : memref<8x32xf32, #tpu.memory_space<vmem>>, vector<8x32xf32>
    %1 = vector.shape_cast %0 : vector<8x32xf32> to vector<8x1x32xf32>
    %c0_1 = arith.constant 0 : index
    %c0_2 = arith.constant 0 : index
    %c0_3 = arith.constant 0 : index
    %2 = vector.load %arg1[%c0_1, %c0_2, %c0_3] : memref<8x2x32xf32, #tpu.memory_space<vmem>>, vector<8x2x32xf32>
    %3 = vector.broadcast %1 : vector<8x1x32xf32> to vector<8x2x32xf32>
    %4 = arith.addf %2, %3 : vector<8x2x32xf32>
    %c0_4 = arith.constant 0 : index
    %c0_5 = arith.constant 0 : index
    %c0_6 = arith.constant 0 : index
    %5 = vector.load %arg3[%c0_4, %c0_5, %c0_6] : memref<8x2x32xi32, #tpu.memory_space<vmem>>, vector<8x2x32xi32>
    %c838861_i32 = arith.constant 838861 : i32
    %6 = vector.broadcast %c838861_i32 : i32 to vector<8x2x32xi32>
    %7 = arith.cmpi sge, %5, %6 : vector<8x2x32xi32>
    %cst = arith.constant 1.11111116 : f32
    %8 = vector.broadcast %cst : f32 to vector<8x2x32xf32>
    %9 = arith.mulf %4, %8 : vector<8x2x32xf32>
    %cst_7 = arith.constant 0.000000e+00 : f32
    %10 = vector.broadcast %cst_7 : f32 to vector<8x2x32xf32>
    %11 = arith.select %7, %9, %10 : vector<8x2x32xi1>, vector<8x2x32xf32>
    %c0_8 = arith.constant 0 : index
    %c0_9 = arith.constant 0 : index
    %c0_10 = arith.constant 0 : index
    %12 = vector.load %arg4[%c0_8, %c0_9, %c0_10] : memref<8x2x32xf32, #tpu.memory_space<vmem>>, vector<8x2x32xf32>
    tpu.vector_store %arg4[%c0_8, %c0_9, %c0_10], %11 {strides = array<i32>} : memref<8x2x32xf32, #tpu.memory_space<vmem>>, vector<8x2x32xf32>,
    return
  }
  func.func @transform_0(%arg0: i32) -> (i32, i32, i32) {
    %c0_i32 = arith.constant 0 : i32
    %c0_i32_0 = arith.constant 0 : i32
    %c0_i32_1 = arith.constant 0 : i32
    return %arg0, %c0_i32, %c0_i32_0 : i32, i32, i32
  }
  func.func @transform_1(%arg0: i32) -> (i32, i32) {
    %c0_i32 = arith.constant 0 : i32
    %c0_i32_0 = arith.constant 0 : i32
    return %arg0, %c0_i32 : i32, i32
  }
  func.func @transform_2(%arg0: i32) -> (i32, i32, i32) {
    %c0_i32 = arith.constant 0 : i32
    %c0_i32_0 = arith.constant 0 : i32
    %c0_i32_1 = arith.constant 0 : i32
    return %arg0, %c0_i32, %c0_i32_0 : i32, i32, i32
  }
  func.func @transform_3(%arg0: i32) -> (i32, i32, i32) {
    %c0_i32 = arith.constant 0 : i32
    %c0_i32_0 = arith.constant 0 : i32
    %c0_i32_1 = arith.constant 0 : i32
    return %arg0, %c0_i32, %c0_i32_0 : i32, i32, i32
  }
}

</mosaic_0001>

<bundles_post_ra>
// kernel: tpu_custom_call.1
= control target key start
LH: loop header
LB: loop body
LE: loop exit
PB: predicated region body
PF: predicated region fallthrough
CT: control target
= control target key end

     0   :  { %vm88_vm0 = vcmask 254976   ;;  %s144_s14 = smov [#allocation2]   ;;  %s235_s0 = inlined_call_operand.vmem [shape: f32[8,2,32], index: 0, kind: input, shape index: {}]   ;;  %s236_s1 = inlined_call_operand.vmem [shape: f32[64,32], index: 1, kind: input, shape index: {}]   ;;  %s237_s2 = inlined_call_operand.vmem [shape: s32[8,2,32], index: 2, kind: input, shape index: {}]   ;;  %s238_s3 = inlined_call_operand.hbm [shape: f32[8,2,32], index: 3, kind: output, shape index: {}]  }
   0x1   :  { %v15_v0 = vld [vmem:[%s236_s1] sm:$0xff]  ;;  %v28_v21 = vld [vmem:[%s235_s0 + $0x8] sm:$0x3]  ;;  %v29_v25 = vld [vmem:[%s235_s0 + $0xa] sm:$0x3]  ;;  %s101_s15 = sshll.u32 %s144_s14, 4  ;;  %s102_s15 = int_to_ptr.vmem [resolvable:$true] %s101_s15 }
   0x2   :  { %v24_v1 = vld [vmem:[%s235_s0] sm:$0x3]  ;;  %v32_v3 = vperm.slane %v15_v0, 0  ;;  %v17_v4 = vrot.slane %v15_v0, 1  ;;  %v25_v5 = vld [vmem:[%s235_s0 + $0x2] sm:$0x3] }
   0x3   :  { %v56_v2 = vld [vmem:[%s237_s2] sm:$0x3]  ;;  %v18_v6 = vrot.slane %v15_v0, 2  ;;  %v57_v7 = vld [vmem:[%s237_s2 + $0x2] sm:$0x3]  ;;  %v19_v14 = vrot.slane %v15_v0, 3 }
   0x4   :  { %vm64_vm1 = vcmp.ge.s32.totalorder %v56_v2, 838861  ;;  %v26_v8 = vld [vmem:[%s235_s0 + $0x4] sm:$0x3]  ;;  %v48_v10 = vadd.f32 %v32_v3, %v24_v1  ;;  %v33_v11 = vperm.slane %v17_v4, 0  ;;  %vm65_vm2 = vcmp.ge.s32.totalorder %v57_v7, 838861  ;;  %s103_s18 = sshll.u32 %s238_s3, 4  ;;  %s104_s18 = int_to_ptr.hbm [resolvable:$true] %s103_s18 }
   0x5   :  { %v58_v9 = vld [vmem:[%s237_s2 + $0x4] sm:$0x3]  ;;  %v34_v12 = vperm.slane %v18_v6, 0  ;;  %v27_v13 = vld [vmem:[%s235_s0 + $0x6] sm:$0x3]  ;;  %v20_v16 = vrot.slane %v15_v0, 4 }
   0x6   :  { %vm66_vm3 = vcmp.ge.s32.totalorder %v58_v9, 838861  ;;  %v59_v15 = vld [vmem:[%s237_s2 + $0x6] sm:$0x3]  ;;  %v21_v17 = vrot.slane %v15_v0, 5  ;;  %v72_v18 = vmul.f32 1.1111112, %v48_v10  ;;  %v49_v19 = vadd.f32 %v33_v11, %v25_v5 }
   0x7   :  { %v50_v20 = vadd.f32 %v34_v12, %v26_v8  ;;  %vm67_vm4 = vcmp.ge.s32.totalorder %v59_v15, 838861  ;;  %v35_v22 = vperm.slane %v19_v14, 0  ;;  %v36_v23 = vperm.slane %v20_v16, 0  ;;  %v60_v24 = vld [vmem:[%s237_s2 + $0x8] sm:$0x3] }
   0x8   :  { %v80_v26 = vsel %vm64_vm1, %v72_v18, 0.0  ;;  %v73_v27 = vmul.f32 1.1111112, %v49_v19  ;;  %vm68_vm5 = vcmp.ge.s32.totalorder %v60_v24, 838861  ;;  %v37_v31 = vperm.slane %v21_v17, 0 }
   0x9   :  { %v74_v28 = vmul.f32 1.1111112, %v50_v20  ;;  %89 = vst.msk [vmem:[#allocation2] sm:$0x3] %vm88_vm0, %v80_v26  ;;  %v51_v29 = vadd.f32 %v35_v22, %v27_v13  ;;  %v52_v30 = vadd.f32 %v36_v23, %v28_v21  ;;  %v61_v32 = vld [vmem:[%s237_s2 + $0xa] sm:$0x3] }
   0xa   :  { %v22_v33 = vrot.slane %v15_v0, 6  ;;  %v81_v34 = vsel %vm65_vm2, %v73_v27, 0.0  ;;  %vm69_vm6 = vcmp.ge.s32.totalorder %v61_v32, 838861  ;;  %v30_v36 = vld [vmem:[%s235_s0 + $0xc] sm:$0x3]  ;;  %v23_v37 = vrot.slane %v15_v0, 7 }
   0xb   :  { %v82_v35 = vsel %vm66_vm3, %v74_v28, 0.0  ;;  %90 = vst.msk [vmem:[#allocation2 + $0x2] sm:$0x3] %vm88_vm0, %v81_v34  ;;  %v75_v38 = vmul.f32 1.1111112, %v51_v29  ;;  %v53_v40 = vadd.f32 %v37_v31, %v29_v25 }
   0xc   :  { %v76_v39 = vmul.f32 1.1111112, %v52_v30  ;;  %91 = vst.msk [vmem:[#allocation2 + $0x4] sm:$0x3] %vm88_vm0, %v82_v35  ;;  %v38_v41 = vperm.slane %v22_v33, 0  ;;  %v39_v43 = vperm.slane %v23_v37, 0 }
   0xd   :  { %v62_v42 = vld [vmem:[%s237_s2 + $0xc] sm:$0x3]  ;;  %v83_v44 = vsel %vm67_vm4, %v75_v38, 0.0  ;;  %v77_v46 = vmul.f32 1.1111112, %v53_v40 }
   0xe   :  { %v84_v45 = vsel %vm68_vm5, %v76_v39, 0.0  ;;  %92 = vst.msk [vmem:[#allocation2 + $0x6] sm:$0x3] %vm88_vm0, %v83_v44  ;;  %v54_v47 = vadd.f32 %v38_v41, %v30_v36  ;;  %v31_v48 = vld [vmem:[%s235_s0 + $0xe] sm:$0x3]  ;;  %vm70_vm7 = vcmp.ge.s32.totalorder %v62_v42, 838861 }
   0xf   :  { %v63_v49 = vld [vmem:[%s237_s2 + $0xe] sm:$0x3]  ;;  %93 = vst.msk [vmem:[#allocation2 + $0x8] sm:$0x3] %vm88_vm0, %v84_v45  ;;  %v85_v50 = vsel %vm69_vm6, %v77_v46, 0.0  ;;  %v55_v51 = vadd.f32 %v39_v43, %v31_v48 }
  0x10   :  { %8 = vsyncpa [#allocation3], 0  ;;  %94 = vst.msk [vmem:[#allocation2 + $0xa] sm:$0x3] %vm88_vm0, %v85_v50  ;;  %v78_v52 = vmul.f32 1.1111112, %v54_v47 }
  0x11   :  { %vm71_vm8 = vcmp.ge.s32.totalorder %v63_v49, 838861  ;;  %v79_v53 = vmul.f32 1.1111112, %v55_v51  ;;  %s145_s0 = smov 32   ;;  %s146_s2 = smov 2  }
  0x12   :  { %v86_v54 = vsel %vm70_vm7, %v78_v52, 0.0 }
  0x13   :  { %95 = vst.msk [vmem:[#allocation2 + $0xc] sm:$0x3] %vm88_vm0, %v86_v54  ;;  %v87_v55 = vsel %vm71_vm8, %v79_v53, 0.0 }
  0x14   :  { %96 = vst.msk [vmem:[#allocation2 + $0xe] sm:$0x3] %vm88_vm0, %v87_v55 }
  0x15   :  { %109 = dma.vmem_to_hbm [thread:$0]  %s102_s15, 256, %s104_s18, [#allocation3], %s145_s0, %s145_s0, %s146_s2  }
  0x16   :  { %142 = dma.done.wait [#allocation3], 256  }
  0x17   :  { %143 = vsyncadd [#allocation3], 4294967040 }
  0x18   :  { %114 = vsyncpa [#allocation3], 1 }

</bundles_post_ra>
